<compile_context>
chip_gen: v7x
topology: tpu7x:2x2x1
jax: 0.10.0
libtpu: 0.0.40
codegen_flags: <defaults>
</compile_context>

<pallas_src>
import functools
import math

import jax
import jax.numpy as jnp
from jax import lax
from jax.experimental import pallas as pl
from jax.experimental.pallas import tpu as pltpu


def _dice_partial_kernel(x_ref, t_ref, u_ref, out_ref, *,
                         hw, s_tile, n_j, need_mask):
    """Accumulate per-class partial sums for one (split, batch, hw-tile) block.

    x_ref, t_ref : (1, C, s_tile, 128) logits (class axis outermost in the block).
    u_ref        : (1, 1, s_tile, 128) uncertainty map.
    out_ref      : (1, 1, 3, C, 128) lane-partial sums [intersect, z_sum, y_sum].
    """
    j = pl.program_id(2)

    @pl.when(j == 0)
    def _init():
        out_ref[...] = jnp.zeros_like(out_ref)

    x = x_ref[0].astype(jnp.float32)     # (C, S, 128)
    t = t_ref[0].astype(jnp.float32)     # (C, S, 128)
    u = u_ref[0].astype(jnp.float32)     # (1, S, 128)

    def _over_classes(a, combine):
        # Reduce the (small, static) leading class axis with plain full-vreg VPU ops.
        acc = a[0]
        for c in range(1, a.shape[0]):
            acc = combine(acc, a[c])
        return acc[None]                 # (1, S, 128)

    def _inv(d):
        r = pl.reciprocal(d, approx=True)        # EUP slot
        return r * (2.0 - d * r)                 # one Newton step -> ~f32 exact

    # softmax over the class axis (== dim=1 of the NCHW tensors)
    xe = jnp.exp(x - _over_classes(x, jnp.maximum))              # (C, S, 128)
    # fold softmax normalization and uncertainty weighting into one broadcast factor
    s = xe * (u * _inv(_over_classes(xe, lambda a, b: a + b)))   # == p * uncertainty

    te = jnp.exp(t - _over_classes(t, jnp.maximum))
    q = te * _inv(_over_classes(te, lambda a, b: a + b))         # (C, S, 128)

    if need_mask:
        # Mask padded / out-of-range hw positions after the softmax: 2 selects total
        # (jnp.where safely discards any NaN/garbage coming from padded lanes).
        jj = pl.program_id(0) * n_j + j                          # logical hw-block id
        row = lax.broadcasted_iota(jnp.int32, (s_tile, 128), 0)
        lane = lax.broadcasted_iota(jnp.int32, (s_tile, 128), 1)
        valid = (((jj * s_tile + row) * 128 + lane) < hw)[None]  # (1, S, 128)
        s = jnp.where(valid, s, 0.0)
        q = jnp.where(valid, q, 0.0)

    # hw reductions: collapse only the sublane (S) axis; the 128 lane-partials stay
    # lane-dense in the resident accumulator and are folded outside the kernel.
    out_ref[0, 0, 0] = out_ref[0, 0, 0] + jnp.sum(s * q, axis=1)   # intersect
    out_ref[0, 0, 1] = out_ref[0, 0, 1] + jnp.sum(s, axis=1)       # z_sum
    out_ref[0, 0, 2] = out_ref[0, 0, 2] + jnp.sum(q, axis=1)       # y_sum


def _pick_s_tile(S, C, itemsize, budget_bytes=4 << 20):
    """Largest sublane tile (multiple of 8, or all of S) within ~budget per input block."""
    max_rows = budget_bytes // (C * 128 * itemsize)
    max_rows = max((max_rows // 8) * 8, 8)
    if S <= max_rows:
        return S                         # single hw block == full extent
    # Prefer a divisor of S near the budget so the tail block needs no masking.
    for d in range(max_rows, max(max_rows // 2, 8) - 1, -8):
        if S % d == 0:
            return d
    return max_rows


def uncertainty_dice_loss(inputs, targets, uncertainty, *, smooth=1e-5):
    """inputs, targets: (B, C, H, W); uncertainty: (B, 1, H, W). Returns scalar loss."""
    B, C, H, W = inputs.shape
    hw = H * W
    S = (hw + 127) // 128
    hw_pad = S * 128

    def _prep(a, c):
        a = a.reshape(a.shape[0], c, hw)
        if hw_pad != hw:                 # pad only for awkward shapes; masked in-kernel
            a = jnp.pad(a, ((0, 0), (0, 0), (0, hw_pad - hw)))
        return a.reshape(a.shape[0], c, S, 128)

    x = _prep(inputs, C)
    t = _prep(targets, C)
    u = _prep(uncertainty, 1)

    itemsize = max(jnp.dtype(inputs.dtype).itemsize, jnp.dtype(targets.dtype).itemsize)
    s_tile = _pick_s_tile(S, C, itemsize)
    num_t = -(-S // s_tile)

    # 2-way hw split so both v7x TensorCores get work even when B == 1 (no-op on
    # single-TC v5e/v6e).  Only enabled when it splits evenly (no extra masking).
    n_split = 2 if (num_t >= 2 and num_t % 2 == 0) else 1
    n_j = num_t // n_split

    need_mask = (hw_pad != hw) or (S % s_tile != 0)

    kernel = functools.partial(
        _dice_partial_kernel, hw=hw, s_tile=s_tile, n_j=n_j, need_mask=need_mask)

    def _in_map(c, b, j, n_j=n_j):
        return (b, 0, c * n_j + j, 0)

    def _out_map(c, b, j):
        return (c, b, 0, 0, 0)

    bytes_in = (2 * C + 1) * B * hw_pad * itemsize
    bytes_out = n_split * B * 3 * C * 128 * 4
    cost = pl.CostEstimate(
        flops=16 * B * C * hw,                        # rough elementwise-op count
        transcendentals=2 * B * (C + 1) * hw,         # 2 softmax exps + 2 reciprocals
        bytes_accessed=bytes_in + bytes_out,
    )

    partials = pl.pallas_call(
        kernel,
        out_shape=jax.ShapeDtypeStruct((n_split, B, 3, C, 128), jnp.float32),
        grid_spec=pltpu.PrefetchScalarGridSpec(
            num_scalar_prefetch=0,
            grid=(n_split, B, n_j),
            in_specs=[
                pl.BlockSpec((1, C, s_tile, 128), _in_map),
                pl.BlockSpec((1, C, s_tile, 128), _in_map),
                pl.BlockSpec((1, 1, s_tile, 128), _in_map),
            ],
            out_specs=pl.BlockSpec((1, 1, 3, C, 128), _out_map),
        ),
        compiler_params=pltpu.CompilerParams(
            dimension_semantics=("parallel", "parallel", "arbitrary"),
            vmem_limit_bytes=48 * 1024 * 1024,   # < v7x's 64 MiB physical VMEM
        ),
        cost_estimate=cost,
    )(x, t, u)

    # Fold the tiny per-(split, batch, lane) partials outside the kernel.
    totals = jnp.sum(partials, axis=(0, 1, 4))            # (3, C)
    intersect, z_sum, y_sum = totals[0], totals[1], totals[2]
    dice = (2.0 * intersect + smooth) / (z_sum + y_sum + smooth)
    return jnp.sum(1.0 - dice) / B


def _reference(inputs, targets, uncertainty, smooth=1e-5):
    """Pure-JAX replica of the PyTorch forward (incl. in-place uncertainty scaling)."""
    B, C, H, W = inputs.shape
    p = jax.nn.softmax(inputs.astype(jnp.float32), axis=1)
    q = jax.nn.softmax(targets.astype(jnp.float32), axis=1)
    u = jnp.squeeze(uncertainty, axis=1).astype(jnp.float32)
    total = jnp.float32(0.0)
    for i in range(C):
        pi = p[:, i] * u
        intersect = jnp.sum(pi * q[:, i])
        y = jnp.sum(q[:, i])
        z = jnp.sum(pi)
        dice = (2.0 * intersect + smooth) / (z + y + smooth)
        total = total + (1.0 - dice)
    return total / B


if __name__ == "__main__":
    key = jax.random.PRNGKey(0)

    # Case 1: hw a multiple of 128 (no masking path), B=2, C=4.
    k1, k2, k3, key = jax.random.split(key, 4)
    B, C, H, W = 2, 4, 16, 16
    inputs = jax.random.normal(k1, (B, C, H, W), dtype=jnp.float32)
    targets = jax.random.normal(k2, (B, C, H, W), dtype=jnp.float32)
    uncertainty = jax.random.uniform(k3, (B, 1, H, W), dtype=jnp.float32)

    loss = jax.block_until_ready(
        jax.jit(uncertainty_dice_loss)(inputs, targets, uncertainty))
    ref = _reference(inputs, targets, uncertainty)
    assert jnp.allclose(loss, ref, rtol=1e-4, atol=1e-5), (loss, ref)

    # Case 2: B=1, odd class count, hw not a multiple of 128 (pad + mask path).
    k1, k2, k3, key = jax.random.split(key, 4)
    B, C, H, W = 1, 3, 10, 10
    inputs = jax.random.normal(k1, (B, C, H, W), dtype=jnp.float32)
    targets = jax.random.normal(k2, (B, C, H, W), dtype=jnp.float32)
    uncertainty = jax.random.uniform(k3, (B, 1, H, W), dtype=jnp.float32)

    loss = jax.block_until_ready(
        jax.jit(uncertainty_dice_loss)(inputs, targets, uncertainty))
    ref = _reference(inputs, targets, uncertainty)
    assert jnp.allclose(loss, ref, rtol=1e-4, atol=1e-5), (loss, ref)

    print("KERNEL_OK")
</pallas_src>

<mosaic_0001>
module attributes {stable_mosaic.version = 11 : i64} {
  func.func @_dice_partial_kernel(%arg0: i32, %arg1: i32, %arg2: i32, %arg3: memref<1x4x2x128xf32, #tpu.memory_space<vmem>>, %arg4: memref<1x4x2x128xf32, #tpu.memory_space<vmem>>, %arg5: memref<1x1x2x128xf32, #tpu.memory_space<vmem>>, %arg6: memref<1x1x3x4x128xf32, #tpu.memory_space<vmem>>) attributes {dimension_semantics = [#tpu.dimension_semantics<parallel>, #tpu.dimension_semantics<parallel>, #tpu.dimension_semantics<arbitrary>], iteration_bounds = array<i64: 1, 2, 1>, scalar_prefetch = 0 : i64, scratch_operands = 0 : i64, tpu.core_type = #tpu.core_type<tc>, window_params = [{transform_indices = @transform_0, window_bounds = array<i64: 1, 4, 2, 128>}, {transform_indices = @transform_1, window_bounds = array<i64: 1, 4, 2, 128>}, {transform_indices = @transform_2, window_bounds = array<i64: 1, 1, 2, 128>}, {transform_indices = @transform_3, window_bounds = array<i64: 1, 1, 3, 4, 128>}]} {
    %c0_i32 = arith.constant 0 : i32
    %0 = arith.cmpi eq, %arg2, %c0_i32 : i32
    %1 = arith.extui %0 : i1 to i32
    %c0_i32_0 = arith.constant 0 : i32
    %2 = arith.cmpi ne, %1, %c0_i32_0 : i32
    scf.if %2 {
      %cst_44 = arith.constant 0.000000e+00 : f32
      %100 = vector.broadcast %cst_44 : f32 to vector<1x1x3x4x128xf32>
      %c0_45 = arith.constant 0 : index
      %c0_46 = arith.constant 0 : index
      %c0_47 = arith.constant 0 : index
      %c0_48 = arith.constant 0 : index
      %c0_49 = arith.constant 0 : index
      %101 = vector.load %arg6[%c0_45, %c0_46, %c0_47, %c0_48, %c0_49] : memref<1x1x3x4x128xf32, #tpu.memory_space<vmem>>, vector<1x1x3x4x128xf32>
      tpu.vector_store %arg6[%c0_45, %c0_46, %c0_47, %c0_48, %c0_49], %100 {strides = array<i32>} : memref<1x1x3x4x128xf32, #tpu.memory_space<vmem>>, vector<1x1x3x4x128xf32>,
    } else {
    }
    %c0 = arith.constant 0 : index
    %c0_1 = arith.constant 0 : index
    %c0_2 = arith.constant 0 : index
    %c0_3 = arith.constant 0 : index
    %3 = vector.load %arg3[%c0, %c0_1, %c0_2, %c0_3] : memref<1x4x2x128xf32, #tpu.memory_space<vmem>>, vector<1x4x2x128xf32>
    %4 = vector.shape_cast %3 : vector<1x4x2x128xf32> to vector<4x2x128xf32>
    %c0_4 = arith.constant 0 : index
    %c0_5 = arith.constant 0 : index
    %c0_6 = arith.constant 0 : index
    %c0_7 = arith.constant 0 : index
    %5 = vector.load %arg4[%c0_4, %c0_5, %c0_6, %c0_7] : memref<1x4x2x128xf32, #tpu.memory_space<vmem>>, vector<1x4x2x128xf32>
    %6 = vector.shape_cast %5 : vector<1x4x2x128xf32> to vector<4x2x128xf32>
    %c0_8 = arith.constant 0 : index
    %c0_9 = arith.constant 0 : index
    %c0_10 = arith.constant 0 : index
    %c0_11 = arith.constant 0 : index
    %7 = vector.load %arg5[%c0_8, %c0_9, %c0_10, %c0_11] : memref<1x1x2x128xf32, #tpu.memory_space<vmem>>, vector<1x1x2x128xf32>
    %8 = vector.shape_cast %7 : vector<1x1x2x128xf32> to vector<1x2x128xf32>
    %9 = vector.extract_strided_slice %4 {offsets = [0, 0, 0], sizes = [1, 2, 128], strides = [1, 1, 1]} : vector<4x2x128xf32> to vector<1x2x128xf32>
    %10 = vector.shape_cast %9 : vector<1x2x128xf32> to vector<2x128xf32>
    %11 = vector.extract_strided_slice %4 {offsets = [1, 0, 0], sizes = [1, 2, 128], strides = [1, 1, 1]} : vector<4x2x128xf32> to vector<1x2x128xf32>
    %12 = vector.shape_cast %11 : vector<1x2x128xf32> to vector<2x128xf32>
    %13 = arith.maximumf %10, %12 : vector<2x128xf32>
    %14 = vector.extract_strided_slice %4 {offsets = [2, 0, 0], sizes = [1, 2, 128], strides = [1, 1, 1]} : vector<4x2x128xf32> to vector<1x2x128xf32>
    %15 = vector.shape_cast %14 : vector<1x2x128xf32> to vector<2x128xf32>
    %16 = arith.maximumf %13, %15 : vector<2x128xf32>
    %17 = vector.extract_strided_slice %4 {offsets = [3, 0, 0], sizes = [1, 2, 128], strides = [1, 1, 1]} : vector<4x2x128xf32> to vector<1x2x128xf32>
    %18 = vector.shape_cast %17 : vector<1x2x128xf32> to vector<2x128xf32>
    %19 = arith.maximumf %16, %18 : vector<2x128xf32>
    %20 = vector.shape_cast %19 : vector<2x128xf32> to vector<1x2x128xf32>
    %21 = vector.broadcast %20 : vector<1x2x128xf32> to vector<4x2x128xf32>
    %22 = arith.subf %4, %21 : vector<4x2x128xf32>
    %23 = math.exp %22 : vector<4x2x128xf32>
    %24 = vector.extract_strided_slice %23 {offsets = [0, 0, 0], sizes = [1, 2, 128], strides = [1, 1, 1]} : vector<4x2x128xf32> to vector<1x2x128xf32>
    %25 = vector.shape_cast %24 : vector<1x2x128xf32> to vector<2x128xf32>
    %26 = vector.extract_strided_slice %23 {offsets = [1, 0, 0], sizes = [1, 2, 128], strides = [1, 1, 1]} : vector<4x2x128xf32> to vector<1x2x128xf32>
    %27 = vector.shape_cast %26 : vector<1x2x128xf32> to vector<2x128xf32>
    %28 = arith.addf %25, %27 : vector<2x128xf32>
    %29 = vector.extract_strided_slice %23 {offsets = [2, 0, 0], sizes = [1, 2, 128], strides = [1, 1, 1]} : vector<4x2x128xf32> to vector<1x2x128xf32>
    %30 = vector.shape_cast %29 : vector<1x2x128xf32> to vector<2x128xf32>
    %31 = arith.addf %28, %30 : vector<2x128xf32>
    %32 = vector.extract_strided_slice %23 {offsets = [3, 0, 0], sizes = [1, 2, 128], strides = [1, 1, 1]} : vector<4x2x128xf32> to vector<1x2x128xf32>
    %33 = vector.shape_cast %32 : vector<1x2x128xf32> to vector<2x128xf32>
    %34 = arith.addf %31, %33 : vector<2x128xf32>
    %35 = vector.shape_cast %34 : vector<2x128xf32> to vector<1x2x128xf32>
    %36 = tpu.reciprocal %35 {approx = true} : vector<1x2x128xf32> -> vector<1x2x128xf32>
    %37 = arith.mulf %35, %36 : vector<1x2x128xf32>
    %cst = arith.constant 2.000000e+00 : f32
    %38 = vector.broadcast %cst : f32 to vector<1x2x128xf32>
    %39 = arith.subf %38, %37 : vector<1x2x128xf32>
    %40 = arith.mulf %36, %39 : vector<1x2x128xf32>
    %41 = arith.mulf %8, %40 : vector<1x2x128xf32>
    %42 = vector.broadcast %41 : vector<1x2x128xf32> to vector<4x2x128xf32>
    %43 = arith.mulf %23, %42 : vector<4x2x128xf32>
    %44 = vector.extract_strided_slice %6 {offsets = [0, 0, 0], sizes = [1, 2, 128], strides = [1, 1, 1]} : vector<4x2x128xf32> to vector<1x2x128xf32>
    %45 = vector.shape_cast %44 : vector<1x2x128xf32> to vector<2x128xf32>
    %46 = vector.extract_strided_slice %6 {offsets = [1, 0, 0], sizes = [1, 2, 128], strides = [1, 1, 1]} : vector<4x2x128xf32> to vector<1x2x128xf32>
    %47 = vector.shape_cast %46 : vector<1x2x128xf32> to vector<2x128xf32>
    %48 = arith.maximumf %45, %47 : vector<2x128xf32>
    %49 = vector.extract_strided_slice %6 {offsets = [2, 0, 0], sizes = [1, 2, 128], strides = [1, 1, 1]} : vector<4x2x128xf32> to vector<1x2x128xf32>
    %50 = vector.shape_cast %49 : vector<1x2x128xf32> to vector<2x128xf32>
    %51 = arith.maximumf %48, %50 : vector<2x128xf32>
    %52 = vector.extract_strided_slice %6 {offsets = [3, 0, 0], sizes = [1, 2, 128], strides = [1, 1, 1]} : vector<4x2x128xf32> to vector<1x2x128xf32>
    %53 = vector.shape_cast %52 : vector<1x2x128xf32> to vector<2x128xf32>
    %54 = arith.maximumf %51, %53 : vector<2x128xf32>
    %55 = vector.shape_cast %54 : vector<2x128xf32> to vector<1x2x128xf32>
    %56 = vector.broadcast %55 : vector<1x2x128xf32> to vector<4x2x128xf32>
    %57 = arith.subf %6, %56 : vector<4x2x128xf32>
    %58 = math.exp %57 : vector<4x2x128xf32>
    %59 = vector.extract_strided_slice %58 {offsets = [0, 0, 0], sizes = [1, 2, 128], strides = [1, 1, 1]} : vector<4x2x128xf32> to vector<1x2x128xf32>
    %60 = vector.shape_cast %59 : vector<1x2x128xf32> to vector<2x128xf32>
    %61 = vector.extract_strided_slice %58 {offsets = [1, 0, 0], sizes = [1, 2, 128], strides = [1, 1, 1]} : vector<4x2x128xf32> to vector<1x2x128xf32>
    %62 = vector.shape_cast %61 : vector<1x2x128xf32> to vector<2x128xf32>
    %63 = arith.addf %60, %62 : vector<2x128xf32>
    %64 = vector.extract_strided_slice %58 {offsets = [2, 0, 0], sizes = [1, 2, 128], strides = [1, 1, 1]} : vector<4x2x128xf32> to vector<1x2x128xf32>
    %65 = vector.shape_cast %64 : vector<1x2x128xf32> to vector<2x128xf32>
    %66 = arith.addf %63, %65 : vector<2x128xf32>
    %67 = vector.extract_strided_slice %58 {offsets = [3, 0, 0], sizes = [1, 2, 128], strides = [1, 1, 1]} : vector<4x2x128xf32> to vector<1x2x128xf32>
    %68 = vector.shape_cast %67 : vector<1x2x128xf32> to vector<2x128xf32>
    %69 = arith.addf %66, %68 : vector<2x128xf32>
    %70 = vector.shape_cast %69 : vector<2x128xf32> to vector<1x2x128xf32>
    %71 = tpu.reciprocal %70 {approx = true} : vector<1x2x128xf32> -> vector<1x2x128xf32>
    %72 = arith.mulf %70, %71 : vector<1x2x128xf32>
    %cst_12 = arith.constant 2.000000e+00 : f32
    %73 = vector.broadcast %cst_12 : f32 to vector<1x2x128xf32>
    %74 = arith.subf %73, %72 : vector<1x2x128xf32>
    %75 = arith.mulf %71, %74 : vector<1x2x128xf32>
    %76 = vector.broadcast %75 : vector<1x2x128xf32> to vector<4x2x128xf32>
    %77 = arith.mulf %58, %76 : vector<4x2x128xf32>
    %c0_13 = arith.constant 0 : index
    %c0_14 = arith.constant 0 : index
    %c0_15 = arith.constant 0 : index
    %c0_16 = arith.constant 0 : index
    %c0_17 = arith.constant 0 : index
    %78 = vector.load %arg6[%c0_13, %c0_14, %c0_15, %c0_16, %c0_17] : memref<1x1x3x4x128xf32, #tpu.memory_space<vmem>>, vector<1x1x1x4x128xf32>
    %79 = vector.shape_cast %78 : vector<1x1x1x4x128xf32> to vector<4x128xf32>
    %80 = arith.mulf %43, %77 : vector<4x2x128xf32>
    %cst_18 = arith.constant dense<0.000000e+00> : vector<4x128xf32>
    %81 = vector.multi_reduction <add>, %80, %cst_18 [1] : vector<4x2x128xf32> to vector<4x128xf32>
    %82 = arith.addf %79, %81 : vector<4x128xf32>
    %c0_19 = arith.constant 0 : index
    %c0_20 = arith.constant 0 : index
    %c0_21 = arith.constant 0 : index
    %c0_22 = arith.constant 0 : index
    %c0_23 = arith.constant 0 : index
    %83 = vector.load %arg6[%c0_19, %c0_20, %c0_21, %c0_22, %c0_23] : memref<1x1x3x4x128xf32, #tpu.memory_space<vmem>>, vector<1x1x1x4x128xf32>
    %84 = vector.shape_cast %83 : vector<1x1x1x4x128xf32> to vector<4x128xf32>
    %85 = vector.shape_cast %82 : vector<4x128xf32> to vector<1x1x1x4x128xf32>
    tpu.vector_store %arg6[%c0_19, %c0_20, %c0_21, %c0_22, %c0_23], %85 {strides = array<i32>} : memref<1x1x3x4x128xf32, #tpu.memory_space<vmem>>, vector<1x1x1x4x128xf32>,
    %c0_24 = arith.constant 0 : index
    %c0_25 = arith.constant 0 : index
    %c1 = arith.constant 1 : index
    %c0_26 = arith.constant 0 : index
    %c0_27 = arith.constant 0 : index
    %86 = vector.load %arg6[%c0_24, %c0_25, %c1, %c0_26, %c0_27] : memref<1x1x3x4x128xf32, #tpu.memory_space<vmem>>, vector<1x1x1x4x128xf32>
    %87 = vector.shape_cast %86 : vector<1x1x1x4x128xf32> to vector<4x128xf32>
    %cst_28 = arith.constant dense<0.000000e+00> : vector<4x128xf32>
    %88 = vector.multi_reduction <add>, %43, %cst_28 [1] : vector<4x2x128xf32> to vector<4x128xf32>
    %89 = arith.addf %87, %88 : vector<4x128xf32>
    %c0_29 = arith.constant 0 : index
    %c0_30 = arith.constant 0 : index
    %c1_31 = arith.constant 1 : index
    %c0_32 = arith.constant 0 : index
    %c0_33 = arith.constant 0 : index
    %90 = vector.load %arg6[%c0_29, %c0_30, %c1_31, %c0_32, %c0_33] : memref<1x1x3x4x128xf32, #tpu.memory_space<vmem>>, vector<1x1x1x4x128xf32>
    %91 = vector.shape_cast %90 : vector<1x1x1x4x128xf32> to vector<4x128xf32>
    %92 = vector.shape_cast %89 : vector<4x128xf32> to vector<1x1x1x4x128xf32>
    tpu.vector_store %arg6[%c0_29, %c0_30, %c1_31, %c0_32, %c0_33], %92 {strides = array<i32>} : memref<1x1x3x4x128xf32, #tpu.memory_space<vmem>>, vector<1x1x1x4x128xf32>,
    %c0_34 = arith.constant 0 : index
    %c0_35 = arith.constant 0 : index
    %c2 = arith.constant 2 : index
    %c0_36 = arith.constant 0 : index
    %c0_37 = arith.constant 0 : index
    %93 = vector.load %arg6[%c0_34, %c0_35, %c2, %c0_36, %c0_37] : memref<1x1x3x4x128xf32, #tpu.memory_space<vmem>>, vector<1x1x1x4x128xf32>
    %94 = vector.shape_cast %93 : vector<1x1x1x4x128xf32> to vector<4x128xf32>
    %cst_38 = arith.constant dense<0.000000e+00> : vector<4x128xf32>
    %95 = vector.multi_reduction <add>, %77, %cst_38 [1] : vector<4x2x128xf32> to vector<4x128xf32>
    %96 = arith.addf %94, %95 : vector<4x128xf32>
    %c0_39 = arith.constant 0 : index
    %c0_40 = arith.constant 0 : index
    %c2_41 = arith.constant 2 : index
    %c0_42 = arith.constant 0 : index
    %c0_43 = arith.constant 0 : index
    %97 = vector.load %arg6[%c0_39, %c0_40, %c2_41, %c0_42, %c0_43] : memref<1x1x3x4x128xf32, #tpu.memory_space<vmem>>, vector<1x1x1x4x128xf32>
    %98 = vector.shape_cast %97 : vector<1x1x1x4x128xf32> to vector<4x128xf32>
    %99 = vector.shape_cast %96 : vector<4x128xf32> to vector<1x1x1x4x128xf32>
    tpu.vector_store %arg6[%c0_39, %c0_40, %c2_41, %c0_42, %c0_43], %99 {strides = array<i32>} : memref<1x1x3x4x128xf32, #tpu.memory_space<vmem>>, vector<1x1x1x4x128xf32>,
    return
  }
  func.func @transform_0(%arg0: i32, %arg1: i32, %arg2: i32) -> (i32, i32, i32, i32) {
    %c1_i32 = arith.constant 1 : i32
    %0 = arith.muli %arg0, %c1_i32 : i32
    %1 = arith.addi %0, %arg2 : i32
    %c0_i32 = arith.constant 0 : i32
    %c0_i32_0 = arith.constant 0 : i32
    %c0_i32_1 = arith.constant 0 : i32
    return %arg1, %c0_i32, %1, %c0_i32_0 : i32, i32, i32, i32
  }
  func.func @transform_1(%arg0: i32, %arg1: i32, %arg2: i32) -> (i32, i32, i32, i32) {
    %c1_i32 = arith.constant 1 : i32
    %0 = arith.muli %arg0, %c1_i32 : i32
    %1 = arith.addi %0, %arg2 : i32
    %c0_i32 = arith.constant 0 : i32
    %c0_i32_0 = arith.constant 0 : i32
    %c0_i32_1 = arith.constant 0 : i32
    return %arg1, %c0_i32, %1, %c0_i32_0 : i32, i32, i32, i32
  }
  func.func @transform_2(%arg0: i32, %arg1: i32, %arg2: i32) -> (i32, i32, i32, i32) {
    %c1_i32 = arith.constant 1 : i32
    %0 = arith.muli %arg0, %c1_i32 : i32
    %1 = arith.addi %0, %arg2 : i32
    %c0_i32 = arith.constant 0 : i32
    %c0_i32_0 = arith.constant 0 : i32
    %c0_i32_1 = arith.constant 0 : i32
    return %arg1, %c0_i32, %1, %c0_i32_0 : i32, i32, i32, i32
  }
  func.func @transform_3(%arg0: i32, %arg1: i32, %arg2: i32) -> (i32, i32, i32, i32, i32) {
    %c0_i32 = arith.constant 0 : i32
    %c0_i32_0 = arith.constant 0 : i32
    %c0_i32_1 = arith.constant 0 : i32
    %c0_i32_2 = arith.constant 0 : i32
    return %arg0, %arg1, %c0_i32, %c0_i32_0, %c0_i32_1 : i32, i32, i32, i32, i32
  }
}

</mosaic_0001>

<bundles_post_ra>
// kernel: uncertainty_dice_loss.1
= control target key start
LH: loop header
LB: loop body
LE: loop exit
PB: predicated region body
PF: predicated region fallthrough
CT: control target
= control target key end

     0   :  { %s722_s12 = smov 0   ;;  %s724_s13 = smov 0   ;;  %s802_s0 = inlined_call_operand.vmem [shape: f32[2,4,2,128], index: 0, kind: input, shape index: {}]   ;;  %s803_s1 = inlined_call_operand.vmem [shape: f32[2,4,2,128], index: 1, kind: input, shape index: {}]   ;;  %s804_s2 = inlined_call_operand.vmem [shape: f32[2,1,2,128], index: 2, kind: input, shape index: {}]   ;;  %s805_s3 = inlined_call_operand.vmem [shape: f32[1,2,3,4,128], index: 3, kind: output, shape index: {}]  }
   0x1   :  { %s726_s14 = smov 0  }
   0x2 LB: > { %s28_s15 = sadd.s32 1, %s695_s13  ;;  %p616_p0 = scmp.ge.s32.totalorder %s699_s14, 1  ;;  %s699_s14 = sphi %s726_s14, %s13_s14   ;;  %s695_s13 = sphi %s724_s13, %s807_s13   ;;  %s691_s12 = sphi %s722_s12, %s806_s12  }
   0x3   : > { %p30_p1 = scmp.ge.s32.totalorder %s28_s15, 2  ;;  %p204_p2 = scmp.lt.s32.totalorder %s699_s14, 3 }
   0x5   : > { %s809_s15 = smov (%p30_p1, %s28_s15), 0  ;;  %p205_p3 = pnand %p616_p0, %p204_p2 }
   0x6   : > { %p254_p4 = scmp.lt.s32.totalorder (!%p205_p3), %s691_s12, 1  ;;  %v701_v3 = vmov (!%p205_p3), 0.0   ;;  %vm365_vm0 = vcmask (!%p205_p3), 1041408   ;;  %vm398_vm1 = vcmask (!%p205_p3), 1041409   ;;  %vm400_vm2 = vcmask (!%p205_p3), 1042434  }
   0x7   : > { %208 = sbr.rel (%p205_p3) target bundleno = 103 (0x67), region = 32  ;;  %vm402_vm3 = vcmask (!%p205_p3), 1043459  }
   0xe   : > { %s811_s12 = smov (!%p254_p4, %s691_s12), 1 }
   0xf   : > { %s629_s16 = sshll.u32 %s811_s12, 3  ;;  %s631_s17 = smul.u32 12, %s811_s12 }
  0x10   : > { %s261_s20 = scalar_lea.vmem %s802_s0, %s629_s16  ;;  %s271_s23 = scalar_lea.vmem %s803_s1, %s629_s16 }
  0x11   : > { %s753_s26 = scalar_lea.vmem %s805_s3, %s631_s17  ;;  %v298_v0 = vld [vmem:[%s261_s20] sm:$0x3]  ;;  %v299_v1 = vld [vmem:[%s261_s20 + $0x2] sm:$0x3]  ;;  %v300_v6 = vld [vmem:[%s261_s20 + $0x4] sm:$0x3] }
  0x12   : > { %v302_v2 = vld [vmem:[%s271_s23] sm:$0x3]  ;;  %295 = vst [vmem:[%s753_s26] sm:$0xf] %v701_v3  ;;  %v303_v4 = vld [vmem:[%s271_s23 + $0x2] sm:$0x3]  ;;  %v307_v5 = vmax.f32 %v298_v0, %v299_v1  ;;  %s621_s27 = sshll.u32 %s811_s12, 1 }
  0x13   : > { %296 = vst [vmem:[%s753_s26 + $0x4] sm:$0xf] %v701_v3  ;;  %297 = vst [vmem:[%s753_s26 + $0x8] sm:$0xf] %v701_v3  ;;  %v334_v7 = vmax.f32 %v302_v2, %v303_v4  ;;  %v301_v8 = vld [vmem:[%s261_s20 + $0x6] sm:$0x3]  ;;  %s280_s30 = scalar_lea.vmem %s804_s2, %s621_s27 }
  0x14   : > { %v304_v9 = vld [vmem:[%s271_s23 + $0x4] sm:$0x3]  ;;  %v305_v10 = vld [vmem:[%s271_s23 + $0x6] sm:$0x3]  ;;  %v308_v11 = vmax.f32 %v307_v5, %v300_v6  ;;  %v306_v49 = vld [vmem:[%s280_s30] sm:$0x3] }
  0x15   : > { %v335_v12 = vmax.f32 %v334_v7, %v304_v9 }
  0x16   : > { %v309_v13 = vmax.f32 %v308_v11, %v301_v8 }
  0x17   : > { %v336_v14 = vmax.f32 %v335_v12, %v305_v10 }
  0x18   : > { %v310_v15 = vsub.f32 %v298_v0, %v309_v13  ;;  %v311_v16 = vsub.f32 %v299_v1, %v309_v13  ;;  %v312_v17 = vsub.f32 %v300_v6, %v309_v13  ;;  %v313_v18 = vsub.f32 %v301_v8, %v309_v13 }
  0x19   : > { %v337_v19 = vsub.f32 %v302_v2, %v336_v14  ;;  %v338_v20 = vsub.f32 %v303_v4, %v336_v14  ;;  %v339_v24 = vsub.f32 %v304_v9, %v336_v14  ;;  %v340_v26 = vsub.f32 %v305_v10, %v336_v14 }
  0x1a   : > { %v314_v21 = vmul.f32 1.442695, %v310_v15  ;;  %v316_v22 = vmul.f32 1.442695, %v311_v16  ;;  %v318_v23 = vmul.f32 1.442695, %v312_v17 }
  0x1b   : > { %v320_v25 = vmul.f32 1.442695, %v313_v18  ;;  %v341_v27 = vmul.f32 1.442695, %v337_v19  ;;  %v343_v28 = vmul.f32 1.442695, %v338_v20 }
  0x1c   : > { %657 = vpow2.f32 %v314_v21  ;;  %v345_v29 = vmul.f32 1.442695, %v339_v24  ;;  %v347_v30 = vmul.f32 1.442695, %v340_v26 }
  0x1d   : > { %659 = vpow2.f32 %v316_v22 }
  0x1e   : > { %661 = vpow2.f32 %v318_v23 }
  0x1f   : > { %663 = vpow2.f32 %v320_v25 }
  0x20   : > { %665 = vpow2.f32 %v341_v27 }
  0x21   : > { %667 = vpow2.f32 %v343_v28 }
  0x22   : > { %669 = vpow2.f32 %v345_v29 }
  0x23   : > { %671 = vpow2.f32 %v347_v30 }
  0x26   : > { %v658_v31 = vpop.eup %657 }
  0x27   : > { %v660_v32 = vpop.eup %659 }
  0x28   : > { %v662_v33 = vpop.eup %661  ;;  %v322_v34 = vadd.f32 %v660_v32, %v658_v31 }
  0x29   : > { %v664_v35 = vpop.eup %663 }
  0x2a   : > { %v666_v36 = vpop.eup %665  ;;  %v323_v37 = vadd.f32 %v662_v33, %v322_v34 }
  0x2b   : > { %v668_v38 = vpop.eup %667 }
  0x2c   : > { %v670_v39 = vpop.eup %669  ;;  %v324_v40 = vadd.f32 %v664_v35, %v323_v37  ;;  %v349_v41 = vadd.f32 %v668_v38, %v666_v36 }
  0x2d   : > { %v672_v42 = vpop.eup %671 }
  0x2e   : > { %673 = vrcp.f32 %v324_v40  ;;  %v350_v43 = vadd.f32 %v670_v39, %v349_v41 }
  0x30   : > { %v351_v44 = vadd.f32 %v672_v42, %v350_v43 }
  0x32   : > { %675 = vrcp.f32 %v351_v44 }
  0x38   : > { %v674_v45 = vpop.eup %673 }
  0x39   : > { %v326_v46 = vmul.f32 %v674_v45, %v324_v40 }
  0x3b   : > { %v327_v47 = vsub.f32 2.0, %v326_v46 }
  0x3c   : > { %v676_v48 = vpop.eup %675 }
  0x3d   : > { %v328_v50 = vmul.f32 %v674_v45, %v327_v47  ;;  %v353_v51 = vmul.f32 %v676_v48, %v351_v44 }
  0x3f   : > { %v329_v52 = vmul.f32 %v328_v50, %v306_v49  ;;  %v354_v53 = vsub.f32 2.0, %v353_v51 }
  0x41   : > { %v330_v54 = vmul.f32 %v658_v31, %v329_v52  ;;  %v331_v55 = vmul.f32 %v660_v32, %v329_v52  ;;  %v332_v56 = vmul.f32 %v662_v33, %v329_v52  ;;  %v333_v57 = vmul.f32 %v664_v35, %v329_v52 }
  0x42   : > { %v355_v58 = vmul.f32 %v676_v48, %v354_v53 }
  0x43   : > { %v409_v59 = vsel %vm365_vm0, %v330_v54, 0.0  ;;  %v416_v60 = vsel %vm365_vm0, %v331_v55, 0.0  ;;  %v423_v61 = vsel %vm365_vm0, %v332_v56, 0.0  ;;  %v430_v62 = vsel %vm365_vm0, %v333_v57, 0.0 }
  0x44   : > { %v356_v63 = vmul.f32 %v666_v36, %v355_v58  ;;  %v357_v0 = vmul.f32 %v668_v38, %v355_v58  ;;  %v358_v1 = vmul.f32 %v670_v39, %v355_v58  ;;  %v766_v2 = vmul.f32 %v672_v42, %v355_v58 }
  0x45   : > { %v410_v3 = vrot.slane %v409_v59, 4  ;;  %v417_v4 = vrot.slane %v416_v60, 4  ;;  %v424_v5 = vrot.slane %v423_v61, 4  ;;  %v431_v6 = vrot.slane %v430_v62, 4 }
  0x46   : > { %v361_v7 = vmul.f32 %v356_v63, %v330_v54  ;;  %v362_v8 = vmul.f32 %v357_v0, %v331_v55  ;;  %v363_v9 = vmul.f32 %v358_v1, %v332_v56  ;;  %v364_v10 = vmul.f32 %v766_v2, %v333_v57 }
  0x47   : > { %v411_v11 = vadd.f32 %v410_v3, %v409_v59  ;;  %v418_v12 = vadd.f32 %v417_v4, %v416_v60  ;;  %v425_v13 = vadd.f32 %v424_v5, %v423_v61  ;;  %v432_v14 = vadd.f32 %v431_v6, %v430_v62  ;;  %v623_v3 = vld [vmem:[%s753_s26 + $0x4] sm:$0xf] }
  0x48   : > { %v366_v15 = vsel %vm365_vm0, %v361_v7, 0.0  ;;  %v373_v16 = vsel %vm365_vm0, %v362_v8, 0.0  ;;  %v380_v17 = vsel %vm365_vm0, %v363_v9, 0.0  ;;  %v387_v18 = vsel %vm365_vm0, %v364_v10, 0.0  ;;  %v360_v8 = vld [vmem:[%s753_s26] sm:$0xf] }
  0x49   : > { %v367_v19 = vrot.slane %v366_v15, 4  ;;  %v374_v20 = vrot.slane %v373_v16, 4  ;;  %v381_v21 = vrot.slane %v380_v17, 4  ;;  %v388_v22 = vrot.slane %v387_v18, 4 }
  0x4a   : > { %v412_v23 = vrot.slane %v411_v11, 2  ;;  %v419_v24 = vrot.slane %v418_v12, 2  ;;  %v426_v25 = vrot.slane %v425_v13, 2  ;;  %v433_v26 = vrot.slane %v432_v14, 2 }
  0x4b   : > { %v368_v27 = vadd.f32 %v367_v19, %v366_v15  ;;  %v375_v28 = vadd.f32 %v374_v20, %v373_v16  ;;  %v382_v29 = vadd.f32 %v381_v21, %v380_v17  ;;  %v389_v30 = vadd.f32 %v388_v22, %v387_v18 }
  0x4c   : > { %v413_v31 = vadd.f32 %v412_v23, %v411_v11  ;;  %v420_v32 = vadd.f32 %v419_v24, %v418_v12  ;;  %v427_v33 = vadd.f32 %v426_v25, %v425_v13  ;;  %v434_v34 = vadd.f32 %v433_v26, %v432_v14 }
  0x4d   : > { %v369_v35 = vrot.slane %v368_v27, 2  ;;  %v376_v36 = vrot.slane %v375_v28, 2  ;;  %v383_v37 = vrot.slane %v382_v29, 2  ;;  %v390_v38 = vrot.slane %v389_v30, 2 }
  0x4e   : > { %v414_v39 = vrot.slane %v413_v31, 1  ;;  %v421_v40 = vrot.slane %v420_v32, 1  ;;  %v428_v41 = vrot.slane %v427_v33, 1  ;;  %v435_v42 = vrot.slane %v434_v34, 1 }
  0x4f   : > { %v370_v43 = vadd.f32 %v369_v35, %v368_v27  ;;  %v377_v44 = vadd.f32 %v376_v36, %v375_v28  ;;  %v384_v45 = vadd.f32 %v383_v37, %v382_v29  ;;  %v391_v46 = vadd.f32 %v390_v38, %v389_v30 }
  0x50   : > { %v415_v47 = vadd.f32 %v414_v39, %v413_v31  ;;  %v422_v48 = vadd.f32 %v421_v40, %v420_v32  ;;  %v429_v49 = vadd.f32 %v428_v41, %v427_v33  ;;  %v436_v50 = vadd.f32 %v435_v42, %v434_v34  ;;  %v625_v33 = vld [vmem:[%s753_s26 + $0x8] sm:$0xf] }
  0x51   : > { %v371_v51 = vrot.slane %v370_v43, 1  ;;  %v378_v52 = vrot.slane %v377_v44, 1  ;;  %v385_v53 = vrot.slane %v384_v45, 1  ;;  %v392_v54 = vrot.slane %v391_v46, 1 }
  0x52   : > { %v441_v55 = vsel %vm398_vm1, %v422_v48, %v415_v47  ;;  %v449_v56 = vsel %vm365_vm0, %v356_v63, 0.0  ;;  %v456_v57 = vsel %vm365_vm0, %v357_v0, 0.0  ;;  %v463_v58 = vsel %vm365_vm0, %v358_v1, 0.0 }
  0x53   : > { %v372_v59 = vadd.f32 %v371_v51, %v370_v43  ;;  %v379_v60 = vadd.f32 %v378_v52, %v377_v44  ;;  %v386_v61 = vadd.f32 %v385_v53, %v384_v45  ;;  %v393_v62 = vadd.f32 %v392_v54, %v391_v46 }
  0x54   : > { %v442_v4 = vsel %vm400_vm2, %v429_v49, %v441_v55  ;;  %v450_v5 = vrot.slane %v449_v56, 4  ;;  %v457_v6 = vrot.slane %v456_v57, 4  ;;  %v464_v7 = vrot.slane %v463_v58, 4 }
  0x55   : > { %v399_v9 = vsel %vm398_vm1, %v379_v60, %v372_v59  ;;  %v443_v63 = vsel %vm402_vm3, %v436_v50, %v442_v4  ;;  %v470_v0 = vsel %vm365_vm0, %v766_v2, 0.0 }
  0x56   : > { %v401_v1 = vsel %vm400_vm2, %v386_v61, %v399_v9  ;;  %v445_v10 = vadd.f32 %v623_v3, %v443_v63  ;;  %v451_v11 = vadd.f32 %v450_v5, %v449_v56  ;;  %v458_v12 = vadd.f32 %v457_v6, %v456_v57 }
  0x57   : > { %v403_v13 = vsel %vm402_vm3, %v393_v62, %v401_v1  ;;  %v465_v14 = vadd.f32 %v464_v7, %v463_v58  ;;  %v471_v15 = vrot.slane %v470_v0, 4 }
  0x58   : > { %v405_v16 = vadd.f32 %v403_v13, %v360_v8  ;;  %624 = vst [vmem:[%s753_s26 + $0x4] sm:$0xf] %v445_v10  ;;  %v452_v17 = vrot.slane %v451_v11, 2  ;;  %v459_v18 = vrot.slane %v458_v12, 2 }
  0x59   : > { %v466_v19 = vrot.slane %v465_v14, 2  ;;  %v472_v20 = vadd.f32 %v471_v15, %v470_v0 }
  0x5a   : > { %406 = vst [vmem:[%s753_s26] sm:$0xf] %v405_v16  ;;  %v453_v21 = vadd.f32 %v452_v17, %v451_v11  ;;  %v460_v22 = vadd.f32 %v459_v18, %v458_v12 }
  0x5b   : > { %v467_v2 = vadd.f32 %v466_v19, %v465_v14  ;;  %v473_v23 = vrot.slane %v472_v20, 2 }
  0x5c   : > { %v454_v24 = vrot.slane %v453_v21, 1  ;;  %v461_v25 = vrot.slane %v460_v22, 1 }
  0x5d   : > { %v468_v26 = vrot.slane %v467_v2, 1  ;;  %v474_v27 = vadd.f32 %v473_v23, %v472_v20 }
  0x5e   : > { %v455_v28 = vadd.f32 %v454_v24, %v453_v21  ;;  %v462_v29 = vadd.f32 %v461_v25, %v460_v22 }
  0x5f   : > { %v469_v30 = vadd.f32 %v468_v26, %v467_v2  ;;  %v475_v31 = vrot.slane %v474_v27, 1 }
  0x60   : > { %v481_v32 = vsel %vm398_vm1, %v462_v29, %v455_v28 }
  0x61   : > { %v476_v34 = vadd.f32 %v475_v31, %v474_v27  ;;  %v482_v35 = vsel %vm400_vm2, %v469_v30, %v481_v32 }
  0x63   : > { %v483_v36 = vsel %vm402_vm3, %v476_v34, %v482_v35 }
  0x64   : > { %v485_v37 = vadd.f32 %v625_v33, %v483_v36 }
  0x66   : > { %626 = vst [vmem:[%s753_s26 + $0x8] sm:$0xf] %v485_v37 }
  0x67 PF: > { %s13_s14 = sadd.s32 1, %s699_s14   ;;  %s806_s12 = smov %s695_s13 }
  0x68   : > { %p10_p5 = scmp.ge.s32.totalorder %s13_s14, 4   ;;  %s807_s13 = smov %s809_s15 }
  0x6a   :  { %12 = sbr.rel (!%p10_p5) target bundleno = 2 (0x2), region = 74 }

</bundles_post_ra>
